<compile_context>
chip_gen: v7x
topology: tpu7x:2x2x1
jax: 0.10.0
libtpu: 0.0.40
codegen_flags: <defaults>
</compile_context>

<pallas_src>
import functools
import math

import jax
import jax.numpy as jnp
from jax.experimental import pallas as pl
from jax.experimental.pallas import tpu as pltpu

DECODER_OUT = 768


def _round_up(x, m):
    return (x + m - 1) // m * m


# ---------------------------------------------------------------------------
# One-time capability probes (cached).
# ---------------------------------------------------------------------------
_BUFFERED1_OK = None


def _probe_copy_kernel(x_ref, o_ref):
    o_ref[...] = x_ref[...]


def _buffered_one_supported():
    """Direct check that BlockSpec(pipeline_mode=pl.Buffered(1)) lowers on this jax.

    Probes a tiny copy kernel once; the real MLM-head kernel is never wrapped in a
    blanket try/except, so its own failures always surface."""
    global _BUFFERED1_OK
    if _BUFFERED1_OK is not None:
        return _BUFFERED1_OK
    ok = False
    if hasattr(pl, "Buffered"):
        try:
            x = jnp.zeros((8, 128), jnp.float32)
            y = pl.pallas_call(
                _probe_copy_kernel,
                out_shape=jax.ShapeDtypeStruct((8, 128), jnp.float32),
                grid=(1,),
                in_specs=[pl.BlockSpec((8, 128), lambda i: (0, 0),
                                       pipeline_mode=pl.Buffered(1))],
                out_specs=pl.BlockSpec((8, 128), lambda i: (0, 0)),
            )(x)
            jax.block_until_ready(y)
            ok = True
        except Exception:
            ok = False
    _BUFFERED1_OK = ok
    return ok


def _vmem_capacity_bytes():
    try:
        return int(pltpu.get_tpu_info().vmem_capacity_bytes)
    except Exception:
        return 64 << 20  # conservative fallback: v7x per-TC VMEM


# ---------------------------------------------------------------------------
# Kernel
# ---------------------------------------------------------------------------
def _mlm_head_kernel(x_ref, w1_ref, b1_ref, w2_ref, b2_ref, o_ref, *,
                     eps, approximate_gelu):
    # mfm_dense: [tm, H] @ [H, H] in native (ideally bf16) dtype, f32 accumulation.
    h = jnp.dot(x_ref[...], w1_ref[...], preferred_element_type=jnp.float32)
    h = h + b1_ref[...]                      # b1 already f32 -> no per-step cast

    if approximate_gelu:
        # tanh-form GELU: the transcendental runs on the EUP (idle slot), relieving
        # the VALU slot which is the binding unit on v6e/v7x.  ~1e-3 deviation from
        # the erf form.
        c = math.sqrt(2.0 / math.pi)
        h = 0.5 * h * (1.0 + jnp.tanh(c * (h + 0.044715 * (h * h * h))))
    else:
        # Exact erf-form GELU (matches the PyTorch reference).
        h = h * 0.5 * (1.0 + jax.lax.erf(h * (1.0 / math.sqrt(2.0))))

    # LayerNorm over the last dim, two-pass (centered) variance: same number of XLU
    # reduces as the one-pass form but no E[x^2] - mean^2 cancellation risk.
    inv_h = 1.0 / h.shape[-1]
    mean = jnp.sum(h, axis=-1, keepdims=True) * inv_h
    d = h - mean
    var = jnp.sum(d * d, axis=-1, keepdims=True) * inv_h
    hn = d * jax.lax.rsqrt(var + eps)

    # gamma/beta were folded into (Wdec, bias) by the wrapper, so no per-element
    # affine here.  mfm_decoder: [tm, H] @ [H, 768], lane-dense 768 output.
    y = jnp.dot(hn.astype(w2_ref.dtype), w2_ref[...],
                preferred_element_type=jnp.float32)
    o_ref[...] = (y + b2_ref[...]).astype(o_ref.dtype)


# ---------------------------------------------------------------------------
# pallas_call wrapper
# ---------------------------------------------------------------------------
def _pallas_forward(x2d, w1, b1, w2, b2, *, tm, eps, approximate_gelu,
                    out_dtype, vmem_limit, single_buffer_weights):
    Mp, H = x2d.shape
    grid = (Mp // tm,)

    w_kw = {}
    if single_buffer_weights:
        # Constant index_map -> one resident VMEM copy of each weight matrix is
        # enough; saves (H*H + H*768)*itemsize of VMEM (matters on v7x's 64 MiB).
        w_kw = dict(pipeline_mode=pl.Buffered(1))

    in_specs = [
        pl.BlockSpec((tm, H), lambda i: (i, 0)),                      # x rows (pipelined)
        pl.BlockSpec((H, H), lambda i: (0, 0), **w_kw),               # W1 (in, out)
        pl.BlockSpec((1, H), lambda i: (0, 0)),                       # b1 (f32)
        pl.BlockSpec((H, DECODER_OUT), lambda i: (0, 0), **w_kw),     # Wdec' = diag(g) @ Wdec
        pl.BlockSpec((1, DECODER_OUT), lambda i: (0, 0)),             # bias' = b @ Wdec + b2
    ]

    return pl.pallas_call(
        functools.partial(_mlm_head_kernel, eps=eps,
                          approximate_gelu=approximate_gelu),
        out_shape=jax.ShapeDtypeStruct((Mp, DECODER_OUT), out_dtype),
        grid_spec=pltpu.PrefetchScalarGridSpec(
            num_scalar_prefetch=0,
            grid=grid,
            in_specs=in_specs,
            out_specs=pl.BlockSpec((tm, DECODER_OUT), lambda i: (i, 0)),
        ),
        compiler_params=pltpu.CompilerParams(
            # Row axis is independent -> megacore shards it across TCs on v7x.
            dimension_semantics=("parallel",),
            vmem_limit_bytes=vmem_limit,
        ),
    )(x2d, w1, b1, w2, b2)


def visual_only_mlm_head(sequence_output, params, *, eps=1e-12, tm=None,
                         approximate_gelu=False, matmul_dtype=None,
                         out_dtype=None):
    """VisualOnlyMLMHead forward: [B, S, H] -> [B, S, 768].

    params = (w1, b1, gamma, beta, w2, b2); linear weights pre-transposed as
    (in_features, out_features).

    approximate_gelu=True : tanh-GELU on the EUP (fast path; ~1e-3 numerics delta).
    matmul_dtype=bf16      : cast matmul operands to bf16 (fast MXU path; recommended
                             on v5e when exact f32 parity is not required).
    out_dtype=bf16         : halve output store / writeback traffic."""
    B, S, H = sequence_output.shape
    M = B * S
    w1, b1, gamma, beta, w2, b2 = params

    # --- fold LayerNorm affine into the decoder, in f32 (preserves gamma precision):
    #     (hn * g + b) @ W2 + b2  ==  hn @ (diag(g) W2) + (b @ W2 + b2)
    w2_f32 = w2.astype(jnp.float32)
    w2_eff = gamma.astype(jnp.float32)[:, None] * w2_f32
    b2_eff = beta.astype(jnp.float32) @ w2_f32 + b2.astype(jnp.float32)

    # --- matmul operand dtype (native by default; bf16 opt-in for the f32 path) ---
    mm_dtype = jnp.dtype(matmul_dtype) if matmul_dtype is not None else jnp.dtype(w1.dtype)
    x2d = sequence_output.reshape(M, H).astype(mm_dtype)
    w1_mm = w1.astype(mm_dtype)
    w2_mm = w2_eff.astype(mm_dtype)

    # Bias / folded decoder bias cast to f32 once here (not per grid step).
    b1_2d = b1.astype(jnp.float32).reshape(1, H)
    b2_2d = b2_eff.astype(jnp.float32).reshape(1, DECODER_OUT)

    if out_dtype is None:
        out_dtype = sequence_output.dtype

    # --- row tile: 512 rows amortizes the ~0.35us per-step overhead; multiple of 16
    # keeps f32(8)/bf16(16) sublane tiling happy.  Clamp so the grid keeps >= 2 steps
    # whenever there are enough rows (v7x has two TensorCores to shard across).
    if tm is None:
        tm = 512
    M16 = _round_up(M, 16)
    tm = max(16, min(_round_up(tm, 16), M16))
    if tm == M16 and M16 >= 32:
        tm = max(16, _round_up(pl.cdiv(M16, 2), 16))

    # Pad ragged row counts up to a tile multiple; padded rows are sliced off below.
    Mp = _round_up(M, tm)
    if Mp != M:
        x2d = jnp.pad(x2d, ((0, Mp - M), (0, 0)))

    # --- explicit VMEM budget: weights (single or double buffered), pipelined I/O
    # tiles, f32 intermediates, headroom; clamp to the real device capacity.
    single_buffer_weights = _buffered_one_supported()
    w_copies = 1 if single_buffer_weights else 2
    mm_isz = jnp.dtype(mm_dtype).itemsize
    w_bytes = (H * H + H * DECODER_OUT) * mm_isz * w_copies
    vec_bytes = 2 * (H + DECODER_OUT) * 4 * 2
    io_bytes = (2 * tm * H * mm_isz
                + 2 * tm * DECODER_OUT * jnp.dtype(out_dtype).itemsize)
    tmp_bytes = 3 * tm * (H + DECODER_OUT) * 4
    need = w_bytes + vec_bytes + io_bytes + tmp_bytes + (8 << 20)
    cap = _vmem_capacity_bytes()
    vmem_limit = int(min(max(need, 16 << 20), max(cap - (8 << 20), 16 << 20)))

    out2d = _pallas_forward(
        x2d, w1_mm, b1_2d, w2_mm, b2_2d,
        tm=tm, eps=eps, approximate_gelu=approximate_gelu,
        out_dtype=out_dtype, vmem_limit=vmem_limit,
        single_buffer_weights=single_buffer_weights)

    if Mp != M:
        out2d = out2d[:M]
    return out2d.reshape(B, S, DECODER_OUT)


# ---------------------------------------------------------------------------
# Synthetic params + pure-JAX reference
# ---------------------------------------------------------------------------
def init_params(key, hidden_size, dtype=jnp.float32):
    """Deterministic synthetic parameters matching the module's shapes.

    Linear weights are stored pre-transposed as (in_features, out_features).
    gamma/beta/biases are made non-trivial so the gamma/beta->decoder fold is
    actually exercised by the correctness check."""
    k1, k2, k3, k4, k5, k6 = jax.random.split(key, 6)
    w1 = (jax.random.normal(k1, (hidden_size, hidden_size), jnp.float32) * 0.02).astype(dtype)
    b1 = jax.random.normal(k2, (hidden_size,), jnp.float32) * 0.02
    gamma = 1.0 + jax.random.normal(k3, (hidden_size,), jnp.float32) * 0.1
    beta = jax.random.normal(k4, (hidden_size,), jnp.float32) * 0.1
    w2 = (jax.random.normal(k5, (hidden_size, DECODER_OUT), jnp.float32) * 0.02).astype(dtype)
    b2 = jax.random.normal(k6, (DECODER_OUT,), jnp.float32) * 0.02   # mfm_bias
    return (w1, b1, gamma, beta, w2, b2)


def _reference(x, params, eps=1e-12):
    """Pure-JAX f32 reference (erf GELU, two-pass LayerNorm, un-folded affine)."""
    w1, b1, gamma, beta, w2, b2 = params
    x = x.astype(jnp.float32)
    h = x @ w1.astype(jnp.float32) + b1
    h = h * 0.5 * (1.0 + jax.lax.erf(h / math.sqrt(2.0)))
    mean = jnp.mean(h, axis=-1, keepdims=True)
    var = jnp.mean((h - mean) ** 2, axis=-1, keepdims=True)
    h = (h - mean) * jax.lax.rsqrt(var + eps)
    h = h * gamma + beta
    return h @ w2.astype(jnp.float32) + b2


if __name__ == "__main__":
    key = jax.random.PRNGKey(0)
    B, S, H = 2, 8, 32  # batch, seq, hidden_size (config.hidden_size)

    kx, kp = jax.random.split(key)
    sequence_output = jax.random.normal(kx, (B, S, H), jnp.float32)
    params = init_params(kp, H)
    ref = _reference(sequence_output, params)

    # 1) f32 path, exact erf GELU: tight tolerance vs the PyTorch-equivalent reference.
    out = jax.block_until_ready(visual_only_mlm_head(sequence_output, params))
    assert out.shape == (B, S, DECODER_OUT)
    assert jnp.allclose(out, ref, atol=1e-4, rtol=1e-4)

    # 2) bf16 fast-MXU path (still exact erf GELU), loose tolerance vs f32 reference.
    w1, b1, gamma, beta, w2, b2 = params
    params_bf16 = (w1.astype(jnp.bfloat16), b1, gamma, beta,
                   w2.astype(jnp.bfloat16), b2)
    x_bf16 = sequence_output.astype(jnp.bfloat16)
    out_bf16 = jax.block_until_ready(visual_only_mlm_head(x_bf16, params_bf16))
    assert out_bf16.shape == (B, S, DECODER_OUT)
    assert jnp.allclose(out_bf16.astype(jnp.float32), ref, atol=1e-1, rtol=1e-1)

    # 3) Fast configuration: bf16 matmuls + tanh-GELU on the EUP + bf16 output.
    out_fast = jax.block_until_ready(
        visual_only_mlm_head(x_bf16, params_bf16, approximate_gelu=True,
                             out_dtype=jnp.bfloat16))
    assert out_fast.shape == (B, S, DECODER_OUT)
    assert out_fast.dtype == jnp.bfloat16
    assert jnp.allclose(out_fast.astype(jnp.float32), ref, atol=1e-1, rtol=1e-1)

    print("KERNEL_OK")
</pallas_src>

<mosaic_0001>
module attributes {stable_mosaic.version = 11 : i64} {
  func.func @_probe_copy_kernel(%arg0: i32, %arg1: memref<8x128xf32, #tpu.memory_space<vmem>>, %arg2: memref<8x128xf32, #tpu.memory_space<vmem>>) attributes {dimension_semantics = [#tpu.dimension_semantics<arbitrary>], iteration_bounds = array<i64: 1>, scalar_prefetch = 0 : i64, scratch_operands = 0 : i64, tpu.core_type = #tpu.core_type<tc>, window_params = [{pipeline_mode = #tpu.pipeline_mode<synchronous>, transform_indices = @transform_0, window_bounds = array<i64: 8, 128>}, {pipeline_mode = #tpu.pipeline_mode<synchronous>, transform_indices = @transform_1, window_bounds = array<i64: 8, 128>}]} {
    %c0 = arith.constant 0 : index
    %c0_0 = arith.constant 0 : index
    %0 = vector.load %arg1[%c0, %c0_0] : memref<8x128xf32, #tpu.memory_space<vmem>>, vector<8x128xf32>
    %c0_1 = arith.constant 0 : index
    %c0_2 = arith.constant 0 : index
    %1 = vector.load %arg2[%c0_1, %c0_2] : memref<8x128xf32, #tpu.memory_space<vmem>>, vector<8x128xf32>
    tpu.vector_store %arg2[%c0_1, %c0_2], %0 {strides = array<i32>} : memref<8x128xf32, #tpu.memory_space<vmem>>, vector<8x128xf32>,
    return
  }
  func.func @transform_0(%arg0: i32) -> (i32, i32) {
    %c0_i32 = arith.constant 0 : i32
    %c0_i32_0 = arith.constant 0 : i32
    %c0_i32_1 = arith.constant 0 : i32
    return %c0_i32, %c0_i32_0 : i32, i32
  }
  func.func @transform_1(%arg0: i32) -> (i32, i32) {
    %c0_i32 = arith.constant 0 : i32
    %c0_i32_0 = arith.constant 0 : i32
    %c0_i32_1 = arith.constant 0 : i32
    return %c0_i32, %c0_i32_0 : i32, i32
  }
}

module attributes {stable_mosaic.version = 11 : i64} {
  func.func @_mlm_head_kernel(%arg0: i32, %arg1: memref<16x32xf32, #tpu.memory_space<vmem>>, %arg2: memref<32x32xf32, #tpu.memory_space<vmem>>, %arg3: memref<1x32xf32, #tpu.memory_space<vmem>>, %arg4: memref<32x768xf32, #tpu.memory_space<vmem>>, %arg5: memref<1x768xf32, #tpu.memory_space<vmem>>, %arg6: memref<16x768xf32, #tpu.memory_space<vmem>>) attributes {dimension_semantics = [#tpu.dimension_semantics<parallel>], iteration_bounds = array<i64: 1>, scalar_prefetch = 0 : i64, scratch_operands = 0 : i64, tpu.core_type = #tpu.core_type<tc>, window_params = [{transform_indices = @transform_0, window_bounds = array<i64: 16, 32>}, {pipeline_mode = #tpu.pipeline_mode<synchronous>, transform_indices = @transform_1, window_bounds = array<i64: 32, 32>}, {pipeline_mode = #tpu.pipeline_mode<synchronous>, transform_indices = @transform_2, window_bounds = array<i64: 1, 32>}, {pipeline_mode = #tpu.pipeline_mode<synchronous>, transform_indices = @transform_3, window_bounds = array<i64: 32, 768>}, {pipeline_mode = #tpu.pipeline_mode<synchronous>, transform_indices = @transform_4, window_bounds = array<i64: 1, 768>}, {transform_indices = @transform_5, window_bounds = array<i64: 16, 768>}]} {
    %c0 = arith.constant 0 : index
    %c0_0 = arith.constant 0 : index
    %0 = vector.load %arg1[%c0, %c0_0] : memref<16x32xf32, #tpu.memory_space<vmem>>, vector<16x32xf32>
    %c0_1 = arith.constant 0 : index
    %c0_2 = arith.constant 0 : index
    %1 = vector.load %arg2[%c0_1, %c0_2] : memref<32x32xf32, #tpu.memory_space<vmem>>, vector<32x32xf32>
    %cst = arith.constant dense<0.000000e+00> : vector<16x32xf32>
    %2 = tpu.matmul %0, %1, %cst {dimension_numbers = #tpu.dot_dimension_numbers<[1], [0], [0], [1], [0, 0, 1, 1], [], []>} : vector<16x32xf32>, vector<32x32xf32>, vector<16x32xf32> -> vector<16x32xf32>
    %c0_3 = arith.constant 0 : index
    %c0_4 = arith.constant 0 : index
    %3 = vector.load %arg3[%c0_3, %c0_4] : memref<1x32xf32, #tpu.memory_space<vmem>>, vector<1x32xf32>
    %4 = vector.broadcast %3 : vector<1x32xf32> to vector<16x32xf32>
    %5 = arith.addf %2, %4 : vector<16x32xf32>
    %cst_5 = arith.constant 5.000000e-01 : f32
    %6 = vector.broadcast %cst_5 : f32 to vector<16x32xf32>
    %7 = arith.mulf %5, %6 : vector<16x32xf32>
    %cst_6 = arith.constant 0.707106769 : f32
    %8 = vector.broadcast %cst_6 : f32 to vector<16x32xf32>
    %9 = arith.mulf %5, %8 : vector<16x32xf32>
    %10 = math.erf %9 : vector<16x32xf32>
    %cst_7 = arith.constant 1.000000e+00 : f32
    %11 = vector.broadcast %cst_7 : f32 to vector<16x32xf32>
    %12 = arith.addf %11, %10 : vector<16x32xf32>
    %13 = arith.mulf %7, %12 : vector<16x32xf32>
    %cst_8 = arith.constant dense<0.000000e+00> : vector<16xf32>
    %14 = vector.multi_reduction <add>, %13, %cst_8 [1] : vector<16x32xf32> to vector<16xf32>
    %15 = vector.shape_cast %14 : vector<16xf32> to vector<16x1xf32>
    %cst_9 = arith.constant 3.125000e-02 : f32
    %16 = vector.broadcast %cst_9 : f32 to vector<16x1xf32>
    %17 = arith.mulf %15, %16 : vector<16x1xf32>
    %18 = vector.broadcast %17 : vector<16x1xf32> to vector<16x32xf32>
    %19 = arith.subf %13, %18 : vector<16x32xf32>
    %20 = arith.mulf %19, %19 : vector<16x32xf32>
    %cst_10 = arith.constant dense<0.000000e+00> : vector<16xf32>
    %21 = vector.multi_reduction <add>, %20, %cst_10 [1] : vector<16x32xf32> to vector<16xf32>
    %22 = vector.shape_cast %21 : vector<16xf32> to vector<16x1xf32>
    %cst_11 = arith.constant 3.125000e-02 : f32
    %23 = vector.broadcast %cst_11 : f32 to vector<16x1xf32>
    %24 = arith.mulf %22, %23 : vector<16x1xf32>
    %cst_12 = arith.constant 9.99999996E-13 : f32
    %25 = vector.broadcast %cst_12 : f32 to vector<16x1xf32>
    %26 = arith.addf %24, %25 : vector<16x1xf32>
    %27 = math.rsqrt %26 : vector<16x1xf32>
    %28 = vector.broadcast %27 : vector<16x1xf32> to vector<16x32xf32>
    %29 = arith.mulf %19, %28 : vector<16x32xf32>
    %c0_13 = arith.constant 0 : index
    %c0_14 = arith.constant 0 : index
    %30 = vector.load %arg4[%c0_13, %c0_14] : memref<32x768xf32, #tpu.memory_space<vmem>>, vector<32x768xf32>
    %cst_15 = arith.constant dense<0.000000e+00> : vector<16x768xf32>
    %31 = tpu.matmul %29, %30, %cst_15 {dimension_numbers = #tpu.dot_dimension_numbers<[1], [0], [0], [1], [0, 0, 1, 1], [], []>} : vector<16x32xf32>, vector<32x768xf32>, vector<16x768xf32> -> vector<16x768xf32>
    %c0_16 = arith.constant 0 : index
    %c0_17 = arith.constant 0 : index
    %32 = vector.load %arg5[%c0_16, %c0_17] : memref<1x768xf32, #tpu.memory_space<vmem>>, vector<1x768xf32>
    %33 = vector.broadcast %32 : vector<1x768xf32> to vector<16x768xf32>
    %34 = arith.addf %31, %33 : vector<16x768xf32>
    %c0_18 = arith.constant 0 : index
    %c0_19 = arith.constant 0 : index
    %35 = vector.load %arg6[%c0_18, %c0_19] : memref<16x768xf32, #tpu.memory_space<vmem>>, vector<16x768xf32>
    tpu.vector_store %arg6[%c0_18, %c0_19], %34 {strides = array<i32>} : memref<16x768xf32, #tpu.memory_space<vmem>>, vector<16x768xf32>,
    return
  }
  func.func @transform_0(%arg0: i32) -> (i32, i32) {
    %c0_i32 = arith.constant 0 : i32
    %c0_i32_0 = arith.constant 0 : i32
    return %arg0, %c0_i32 : i32, i32
  }
  func.func @transform_1(%arg0: i32) -> (i32, i32) {
    %c0_i32 = arith.constant 0 : i32
    %c0_i32_0 = arith.constant 0 : i32
    %c0_i32_1 = arith.constant 0 : i32
    return %c0_i32, %c0_i32_0 : i32, i32
  }
  func.func @transform_2(%arg0: i32) -> (i32, i32) {
    %c0_i32 = arith.constant 0 : i32
    %c0_i32_0 = arith.constant 0 : i32
    %c0_i32_1 = arith.constant 0 : i32
    return %c0_i32, %c0_i32_0 : i32, i32
  }
  func.func @transform_3(%arg0: i32) -> (i32, i32) {
    %c0_i32 = arith.constant 0 : i32
    %c0_i32_0 = arith.constant 0 : i32
    %c0_i32_1 = arith.constant 0 : i32
    return %c0_i32, %c0_i32_0 : i32, i32
  }
  func.func @transform_4(%arg0: i32) -> (i32, i32) {
    %c0_i32 = arith.constant 0 : i32
    %c0_i32_0 = arith.constant 0 : i32
    %c0_i32_1 = arith.constant 0 : i32
    return %c0_i32, %c0_i32_0 : i32, i32
  }
  func.func @transform_5(%arg0: i32) -> (i32, i32) {
    %c0_i32 = arith.constant 0 : i32
    %c0_i32_0 = arith.constant 0 : i32
    return %arg0, %c0_i32 : i32, i32
  }
}

</mosaic_0001>

<bundles_post_ra>
// kernel: tpu_custom_call.1
= control target key start
LH: loop header
LB: loop body
LE: loop exit
PB: predicated region body
PF: predicated region fallthrough
CT: control target
= control target key end

     0   :  { %6 = vsyncpa [#allocation3], 0  ;;  %s124_s0 = inlined_call_operand.hbm [shape: f32[8,128], index: 0, kind: input, shape index: {}]   ;;  %s125_s1 = inlined_call_operand.hbm [shape: f32[8,128], index: 1, kind: output, shape index: {}]  }
   0x1   :  { %7 = vsyncpa [#allocation4], 0  ;;  %s88_s6 = smov [#allocation2]   ;;  %s40_s10 = scalar_lea.hbm %s124_s0, 128 }
   0x2   :  { %s14_s7 = sshll.u32 %s88_s6, 4  ;;  %p41_p0 = scmp.ne.s32.totalorder %s124_s0, %s40_s10  ;;  %s15_s7 = int_to_ptr.vmem [resolvable:$true] %s14_s7 }
   0x3   :  { %p44_p1 = scmp.lt.u32.totalorder %s40_s10, %s124_s0 }
   0x5   :  { %p46_p2 = pnand %p44_p1, %p41_p0 }
   0x7   :  { %49 = shalt.err (!%p46_p2)
}
   0x8   :  { %s50_s15 = scalar_lea.vmem %s15_s7, 128  ;;  %p55_p4 = scmp.lt.s32.totalorder %s15_s7, %s15_s7 }
   0x9   :  { %p51_p3 = scmp.ne.s32.totalorder %s15_s7, %s50_s15  ;;  %p56_p5 = scmp.lt.s32.totalorder %s50_s15, %s50_s15 }
   0xb   :  { %p57_p6 = por %p56_p5, %p55_p4 }
   0xd   :  { %p58_p7 = pnand %p57_p6, %p51_p3 }
   0xf   :  { %61 = shalt.err (!%p58_p7)
}
  0x10   :  { %17 = dma.hbm_to_vmem [thread:$0]  %s124_s0, 128, %s15_s7, [#allocation3]  }
  0x11   :  { %84 = dma.done.wait [#allocation3], 128  }
  0x12   :  { %85 = vsyncadd [#allocation3], 4294967168  ;;  %s89_s18 = smov [#allocation5]   ;;  %v21_v0 = vld [vmem:[#allocation2] sm:$0xff] }
  0x13   :  { %s29_s19 = sshll.u32 %s89_s18, 4  ;;  %22 = vst [vmem:[#allocation5] sm:$0xff] %v21_v0  ;;  %s30_s19 = int_to_ptr.vmem [resolvable:$true] %s29_s19 }
  0x14   :  { %s62_s20 = scalar_lea.vmem %s30_s19, 128  ;;  %p67_p9 = scmp.lt.s32.totalorder %s30_s19, %s30_s19 }
  0x15   :  { %p63_p8 = scmp.ne.s32.totalorder %s30_s19, %s62_s20  ;;  %p68_p10 = scmp.lt.s32.totalorder %s62_s20, %s62_s20 }
  0x17   :  { %p69_p11 = por %p68_p10, %p67_p9 }
  0x19   :  { %p70_p12 = pnand %p69_p11, %p63_p8 }
  0x1b   :  { %73 = shalt.err (!%p70_p12)
}
  0x1c   :  { %s74_s23 = scalar_lea.hbm %s125_s1, 128 }
  0x1d   :  { %p75_p13 = scmp.ne.s32.totalorder %s125_s1, %s74_s23  ;;  %p78_p0 = scmp.lt.u32.totalorder %s74_s23, %s125_s1 }
  0x1f   :  { %p80_p1 = pnand %p78_p0, %p75_p13 }
  0x21   :  { %83 = shalt.err (!%p80_p1)
}
  0x22   :  { %32 = dma.vmem_to_hbm [thread:$0]  %s30_s19, 128, %s125_s1, [#allocation4]  }
  0x23   :  { %86 = dma.done.wait [#allocation4], 128  }
  0x24   :  { %87 = vsyncadd [#allocation4], 4294967168 }
  0x25   :  { %36 = vsyncpa [#allocation3], 1 }
  0x26   :  { %37 = vsyncpa [#allocation4], 1 }

// kernel: tpu_custom_call.1
= control target key start
LH: loop header
LB: loop body
LE: loop exit
PB: predicated region body
PF: predicated region fallthrough
CT: control target
= control target key end

     0   :  { %10 = vsyncpa [#allocation3], 0  ;;  %s813_s0 = inlined_call_operand.hbm [shape: f32[16,32], index: 0, kind: input, shape index: {}]   ;;  %s814_s1 = inlined_call_operand.hbm [shape: f32[32,32], index: 1, kind: input, shape index: {}]   ;;  %s815_s2 = inlined_call_operand.vmem [shape: f32[1,32], index: 2, kind: input, shape index: {}]   ;;  %s816_s3 = inlined_call_operand.hbm [shape: f32[32,768], index: 3, kind: input, shape index: {}]   ;;  %s817_s4 = inlined_call_operand.vmem [shape: f32[1,768], index: 4, kind: input, shape index: {}]   ;;  %s818_s5 = inlined_call_operand.hbm [shape: f32[16,768], index: 5, kind: output, shape index: {}]  }
   0x1   :  { %11 = vsyncpa [#allocation6], 0 }
   0x2   :  { %12 = vsyncpa [#allocation4], 0  ;;  %s685_s18 = smov [#allocation5]   ;;  %s686_s20 = smov [#allocation2]  }
   0x3   :  { %s30_s19 = sshll.u32 %s685_s18, 4  ;;  %s18_s21 = sshll.u32 %s686_s20, 4  ;;  %s31_s19 = int_to_ptr.vmem [resolvable:$true] %s30_s19  ;;  %s724_s21 = int_to_ptr.vmem [resolvable:$true] %s18_s21 }
   0x4   :  { %s591_s24 = scalar_lea.hbm %s814_s1, 512 }
   0x5   :  { %p592_p0 = scmp.ne.s32.totalorder %s814_s1, %s591_s24  ;;  %p595_p1 = scmp.lt.u32.totalorder %s591_s24, %s814_s1 }
   0x7   :  { %p597_p2 = pnand %p595_p1, %p592_p0 }
   0x9   :  { %600 = shalt.err (!%p597_p2)
}
   0xa   :  { %s601_s29 = scalar_lea.vmem %s31_s19, 512  ;;  %p606_p4 = scmp.lt.s32.totalorder %s31_s19, %s31_s19 }
   0xb   :  { %p602_p3 = scmp.ne.s32.totalorder %s31_s19, %s601_s29  ;;  %p607_p5 = scmp.lt.s32.totalorder %s601_s29, %s601_s29 }
   0xd   :  { %p608_p6 = por %p607_p5, %p606_p4 }
   0xf   :  { %p609_p7 = pnand %p608_p6, %p602_p3 }
  0x11   :  { %612 = shalt.err (!%p609_p7)
}
  0x12   :  { %s687_s30 = smov 128   ;;  %s688_s6 = smov 8  }
  0x13   :  { %36 = dma.hbm_to_vmem [thread:$0]  %s814_s1, 512, %s31_s19, [#allocation6], %s687_s30, %s687_s30, %s688_s6  }
  0x14   :  { %s613_s11 = scalar_lea.hbm %s813_s0, 256 }
  0x15   :  { %p614_p8 = scmp.ne.s32.totalorder %s813_s0, %s613_s11  ;;  %p617_p9 = scmp.lt.u32.totalorder %s613_s11, %s813_s0 }
  0x17   :  { %p619_p10 = pnand %p617_p9, %p614_p8 }
  0x19   :  { %622 = shalt.err (!%p619_p10)
}
  0x1a   :  { %s623_s16 = scalar_lea.vmem %s724_s21, 256  ;;  %p628_p12 = scmp.lt.s32.totalorder %s724_s21, %s724_s21 }
  0x1b   :  { %p624_p11 = scmp.ne.s32.totalorder %s724_s21, %s623_s16  ;;  %p629_p13 = scmp.lt.s32.totalorder %s623_s16, %s623_s16 }
  0x1d   :  { %p630_p0 = por %p629_p13, %p628_p12 }
  0x1f   :  { %p631_p1 = pnand %p630_p0, %p624_p11 }
  0x21   :  { %634 = shalt.err (!%p631_p1)
}
  0x22   :  { %24 = dma.hbm_to_vmem [thread:$0]  %s813_s0, 256, %s724_s21, [#allocation3], %s687_s30, %s687_s30, %s688_s6  }
  0x23   :  { %s689_s18 = smov [#allocation7]   ;;  %s635_s23 = scalar_lea.hbm %s816_s3, 3072 }
  0x24   :  { %s44_s19 = sshll.u32 %s689_s18, 4  ;;  %p636_p2 = scmp.ne.s32.totalorder %s816_s3, %s635_s23  ;;  %s45_s19 = int_to_ptr.vmem [resolvable:$true] %s44_s19 }
  0x25   :  { %p639_p3 = scmp.lt.u32.totalorder %s635_s23, %s816_s3 }
  0x27   :  { %p641_p4 = pnand %p639_p3, %p636_p2 }
  0x29   :  { %644 = shalt.err (!%p641_p4)
}
  0x2a   :  { %s645_s28 = scalar_lea.vmem %s45_s19, 3072  ;;  %p650_p6 = scmp.lt.s32.totalorder %s45_s19, %s45_s19 }
  0x2b   :  { %p646_p5 = scmp.ne.s32.totalorder %s45_s19, %s645_s28  ;;  %p651_p7 = scmp.lt.s32.totalorder %s645_s28, %s645_s28 }
  0x2d   :  { %p652_p8 = por %p651_p7, %p650_p6 }
  0x2f   :  { %p653_p9 = pnand %p652_p8, %p646_p5 }
  0x31   :  { %656 = shalt.err (!%p653_p9)
}
  0x32   :  { %s690_s0 = smov 768   ;;  %s691_s21 = smov 48  }
  0x33   :  { %50 = dma.hbm_to_vmem [thread:$0]  %s816_s3, 3072, %s45_s19, [#allocation6], %s690_s0, %s690_s0, %s691_s21  }
  0x34   :  { %679 = dma.done.wait [#allocation3], 256  }
  0x35   :  { %680 = vsyncadd [#allocation3], 4294967040 }
  0x36   :  { %681 = dma.done.wait [#allocation6], 3584  }
  0x37   :  { %682 = vsyncadd [#allocation6], 4294963712  ;;  %vm75_vm0 = vcmask 261120   ;;  %v64_v0 = vld [vmem:[#allocation5] sm:$0xff]  ;;  %v65_v1 = vld [vmem:[#allocation5 + $0x8] sm:$0xff]  ;;  %v692_v51 = vmov 0.0  }
  0x38   :  { %v66_v2 = vld [vmem:[#allocation5 + $0x10] sm:$0xff]  ;;  %v542_v3 = vpack.c.bf16 %v65_v1, %v64_v0  ;;  %v67_v4 = vld [vmem:[#allocation5 + $0x18] sm:$0xff]  ;;  %v194_v35 = vld [vmem:[#allocation7 + $0x8] sm:$0xff]  ;;  %319 = vmatprep.mubr.f32.mxu1 %v692_v51 }
  0x39   :  { %v62_v5 = vld [vmem:[#allocation2] sm:$0xff]  ;;  %v546_v6 = vpack.c.bf16 %v67_v4, %v66_v2  ;;  %v63_v7 = vld [vmem:[#allocation2 + $0x8] sm:$0xff]  ;;  %v193_v39 = vld [vmem:[#allocation7] sm:$0xff] }
  0x3a   :  { %539 = vmatprep.mubr.msk.f32.mxu0 %vm75_vm0, %v62_v5  ;;  %543 = vmatprep.subr.bf16.mxu0 %v542_v3  ;;  %v516_v8 = vld [vmem:[%s815_s2] ss:$0 sm:$0xff]  ;;  %v200_v36 = vld [vmem:[#allocation7 + $0x38] sm:$0xff]  ;;  %v202_v41 = vld [vmem:[#allocation7 + $0x48] sm:$0xff] }
  0x3b   :  { %545 = vmatpush3.bf16.msra.mxu0 %v542_v3  ;;  %v196_v37 = vld [vmem:[#allocation7 + $0x18] sm:$0xff]  ;;  %v550_v38 = vpack.c.bf16 %v200_v36, %v194_v35  ;;  %v199_v40 = vld [vmem:[#allocation7 + $0x30] sm:$0xff]  ;;  %v201_v45 = vld [vmem:[#allocation7 + $0x40] sm:$0xff] }
  0x3c   :  { %547 = vmatprep.subr.bf16.mxu0 %v546_v6  ;;  %v552_v42 = vpack.c.bf16 %v199_v40, %v193_v39  ;;  %v558_v43 = vpack.c.bf16 %v202_v41, %v196_v37  ;;  %v195_v44 = vld [vmem:[#allocation7 + $0x10] sm:$0xff]  ;;  %v206_v46 = vld [vmem:[#allocation7 + $0x68] sm:$0xff]  ;;  %v212_v48 = vld [vmem:[#allocation7 + $0x98] sm:$0xff] }
  0x3d   :  { %551 = vmatprep.subr.bf16.mxu1 %v550_v38  ;;  %v560_v47 = vpack.c.bf16 %v201_v45, %v195_v44  ;;  %v205_v49 = vld [vmem:[#allocation7 + $0x60] sm:$0xff]  ;;  %v211_v50 = vld [vmem:[#allocation7 + $0x90] sm:$0xff]  ;;  %v554_v52 = vpack.c.bf16 %v212_v48, %v206_v46  ;;  %v208_v54 = vld [vmem:[#allocation7 + $0x78] sm:$0xff] }
  0x3e   :  { %553 = vmatpush1.bf16.msra.mxu1 %v552_v42  ;;  %v556_v53 = vpack.c.bf16 %v211_v50, %v205_v49  ;;  %v214_v55 = vld [vmem:[#allocation7 + $0xa8] sm:$0xff]  ;;  %v207_v56 = vld [vmem:[#allocation7 + $0x70] sm:$0xff]  ;;  %v213_v58 = vld [vmem:[#allocation7 + $0xa0] sm:$0xff] }
  0x3f   :  { %549 = vmatpush3.bf16.msra.mxu0 %v546_v6  ;;  %v562_v57 = vpack.c.bf16 %v214_v55, %v208_v54  ;;  %v198_v59 = vld [vmem:[#allocation7 + $0x28] sm:$0xff]  ;;  %v204_v60 = vld [vmem:[#allocation7 + $0x58] sm:$0xff]  ;;  %555 = vmatprep.subr.bf16.mxu1 %v554_v52  ;;  %v564_v61 = vpack.c.bf16 %v213_v58, %v207_v56  ;;  %v197_v5 = vld [vmem:[#allocation7 + $0x20] sm:$0xff] }
  0x40   :  { %559 = vmatprep.subr.bf16.mxu0 %v558_v43  ;;  %v566_v62 = vpack.c.bf16 %v204_v60, %v198_v59  ;;  %v203_v6 = vld [vmem:[#allocation7 + $0x50] sm:$0xff] }
  0x42   :  { %540 = vmatmul.mubr.msk.f32.vlgmr.msra.gmra.mrb[0].mxu0 %vm75_vm0, %v63_v7  ;;  %557 = vmatpush1.bf16.msra.mxu1 %v556_v53  ;;  %v210_v7 = vld [vmem:[#allocation7 + $0x88] sm:$0xff] }
  0x43   :  { %561 = vmatpush1.bf16.msra.mxu0 %v560_v47  ;;  %396 = vmatprep.mubr.f32.mxu0 %v692_v51 }
  0x44   :  { %563 = vmatprep.subr.bf16.mxu0 %v562_v57  ;;  %567 = vmatprep.subr.bf16.mxu1 %v566_v62 }
  0x47   :  { %565 = vmatpush1.bf16.msra.mxu0 %v564_v61 }
 0x115   :  { %v541_v9 = vpop.f32.mrb[0].mxu0 }
 0x116   :  { %v154_v10 = vadd.f32 %v541_v9, %v516_v8  ;;  %v148_v11 = vpop.f32.mrb[1].mxu0 }
 0x117   :  { %v149_v12 = vadd.f32 %v516_v8, %v148_v11  ;;  %v216_v8 = vld [vmem:[#allocation7 + $0xb8] sm:$0xff] }
 0x118   :  { %v160_v13 = vmul.f32 0.70710677, %v154_v10  ;;  %v158_v20 = vmul.f32 0.5, %v154_v10  ;;  %v568_v10 = vpack.c.bf16 %v203_v6, %v197_v5 }
 0x119   :  { %v159_v14 = vmul.f32 0.70710677, %v149_v12  ;;  %v157_v17 = vmul.f32 0.5, %v149_v12  ;;  %v570_v12 = vpack.c.bf16 %v216_v8, %v210_v7 }
 0x11a   :  { %583 = verf.f32 %v160_v13  ;;  %v209_v13 = vld [vmem:[#allocation7 + $0x80] sm:$0xff] }
 0x11b   :  { %585 = verf.f32 %v159_v14  ;;  %v215_v14 = vld [vmem:[#allocation7 + $0xb0] sm:$0xff] }
 0x124   :  { %v584_v15 = vpop.eup %583 }
 0x125   :  { %v586_v16 = vpop.eup %585  ;;  %v164_v19 = vadd.f32 1.0, %v584_v15 }
 0x126   :  { %v163_v18 = vadd.f32 1.0, %v586_v16  ;;  %v572_v16 = vpack.c.bf16 %v215_v14, %v209_v13 }
 0x127   :  { %v166_v23 = vmul.f32 %v164_v19, %v158_v20 }
 0x128   :  { %v165_v21 = vmul.f32 %v163_v18, %v157_v17  ;;  %v219_v18 = vlaneseq }
 0x129   :  { %v170_v24 = vsel %vm75_vm0, %v166_v23, 0.0 }
 0x12a   :  { %v167_v22 = vsel %vm75_vm0, %v165_v21, 0.0  ;;  %v220_v19 = vshrl.u32 %v219_v18, 7 }
 0x12b   :  { %168 = vadd.xlane.f32.xlu0 %v167_v22  ;;  %v217_v22 = vld [vmem:[%s817_s4] sm:$0x3f]  ;;  %s693_s4 = smov [#allocation8]  }
 0x12c   :  { %v221_v20 = vsub.s32 0, %v220_v19  ;;  %v237_v35 = vsub.s32 4, %v220_v19  ;;  %v241_v38 = vsub.s32 5, %v220_v19  ;;  %s503_s8 = sshll.u32 %s693_s4, 4  ;;  %s504_s8 = int_to_ptr.vmem [resolvable:$true] %s503_s8 }
 0x12d   :  { %s657_s9 = scalar_lea.vmem %s504_s8, 1536  ;;  %p662_p11 = scmp.lt.s32.totalorder %s504_s8, %s504_s8 }
 0x12e   :  { %v238_v45 = vrot.slane %v217_v22, %v237_v35  ;;  %v242_v48 = vrot.slane %v217_v22, %v241_v38  ;;  %p658_p10 = scmp.ne.s32.totalorder %s504_s8, %s657_s9  ;;  %p663_p12 = scmp.lt.s32.totalorder %s657_s9, %s657_s9 }
 0x12f   :  { %171 = vadd.xlane.f32.xlu0 %v170_v24  ;;  %v233_v24 = vsub.s32 3, %v220_v19 }
 0x130   :  { %p664_p13 = por %p663_p12, %p662_p11 }
 0x132   :  { %p665_p0 = pnand %p664_p13, %p658_p10 }
 0x1b8   :  { %v169_v25 = vpop.xlane.xlu0 %168 }
 0x1b9   :  { %v173_v26 = vmul.f32 0.03125, %v169_v25  ;;  %v222_v25 = vrot.slane %v217_v22, %v221_v20 }
 0x1bb   :  { %v777_v27 = vsub.f32 %v165_v21, %v173_v26  ;;  %v229_v21 = vsub.s32 2, %v220_v19 }
 0x1bc   :  { %v172_v28 = vpop.xlane.xlu0 %171 }
 0x1bd   :  { %v174_v29 = vmul.f32 0.03125, %v172_v28  ;;  %v177_v30 = vmul.f32 %v777_v27, %v777_v27  ;;  %v230_v26 = vrot.slane %v217_v22, %v229_v21  ;;  %v234_v28 = vrot.slane %v217_v22, %v233_v24 }
 0x1bf   :  { %v781_v31 = vsub.f32 %v166_v23, %v174_v29  ;;  %v179_v32 = vsel %vm75_vm0, %v177_v30, 0.0  ;;  %v225_v23 = vsub.s32 1, %v220_v19 }
 0x1c0   :  { %180 = vadd.xlane.f32.xlu1 %v179_v32 }
 0x1c1   :  { %v178_v33 = vmul.f32 %v781_v31, %v781_v31 }
 0x1c3   :  { %v182_v34 = vsel %vm75_vm0, %v178_v33, 0.0 }
 0x1c4   :  { %183 = vadd.xlane.f32.xlu1 %v182_v34 }
 0x24d   :  { %v181_v63 = vpop.xlane.xlu1 %180 }
 0x24e   :  { %v185_v0 = vmul.f32 0.03125, %v181_v63 }
 0x250   :  { %v187_v1 = vadd.f32 1e-12, %v185_v0 }
 0x251   :  { %v184_v2 = vpop.xlane.xlu1 %183 }
 0x252   :  { %587 = vrsqrt.f32 %v187_v1  ;;  %v186_v3 = vmul.f32 0.03125, %v184_v2 }
 0x254   :  { %v188_v4 = vadd.f32 1e-12, %v186_v3 }
 0x256   :  { %589 = vrsqrt.f32 %v188_v4 }
 0x25c   :  { %v588_v9 = vpop.eup %587 }
 0x25d   :  { %v191_v11 = vmul.f32 %v588_v9, %v777_v27  ;;  %v226_v27 = vrot.slane %v217_v22, %v225_v23 }
 0x25f   :  { %519 = vmatmul.mubr.msk.f32.vlgmr.msra.gmra.mrb[0].mxu1 %vm75_vm0, %v191_v11  ;;  %521 = vmatmul.mubr.msk.f32.vlgmr.msra.gmra.mrb[2].mxu0 %vm75_vm0, %v191_v11 }
 0x260   :  { %v590_v15 = vpop.eup %589  ;;  %569 = vmatpush1.bf16.msra.mxu1 %v568_v10  ;;  %325 = vmatprep.mubr.f32.mxu1 %v692_v51 }
 0x261   :  { %402 = vmatprep.mubr.f32.mxu0 %v692_v51  ;;  %571 = vmatprep.subr.bf16.mxu1 %v570_v12  ;;  %v192_v17 = vmul.f32 %v590_v15, %v781_v31 }
 0x263   :  { %520 = vmatmul.mubr.msk.f32.gmra.mrb[2].mxu1 %vm75_vm0, %v192_v17  ;;  %522 = vmatmul.mubr.msk.f32.gmra.mrb[4].mxu0 %vm75_vm0, %v192_v17 }
 0x264   :  { %573 = vmatpush1.bf16.msra.mxu1 %v572_v16  ;;  %473 = vmatprep.mubr.f32.mxu1 %v692_v51 }
 0x267   :  { %523 = vmatmul.mubr.msk.f32.vlgmr.msra.gmra.mrb[4].mxu1 %vm75_vm0, %v191_v11 }
 0x268   :  { %479 = vmatprep.mubr.f32.mxu1 %v692_v51 }
 0x26b   :  { %524 = vmatmul.mubr.msk.f32.gmra.mrb[6].mxu1 %vm75_vm0, %v192_v17 }
 0x332   :  { %v321_v29 = vpop.f32.mrb[0].mxu1  ;;  %v398_v30 = vpop.f32.mrb[2].mxu0 }
 0x333   :  { %v322_v31 = vadd.f32 %v321_v29, %v222_v25  ;;  %v399_v32 = vadd.f32 %v398_v30, %v230_v26  ;;  %v323_v33 = vpop.f32.mrb[1].mxu1  ;;  %v400_v34 = vpop.f32.mrb[3].mxu0 }
 0x334   :  { %v324_v36 = vadd.f32 %v323_v33, %v226_v27  ;;  %v401_v37 = vadd.f32 %v400_v34, %v234_v28 }
 0x335   :  { %486 = vst [vmem:[#allocation8] sm:$0xff] %v322_v31  ;;  %488 = vst [vmem:[#allocation8 + $0x10] sm:$0xff] %v399_v32 }
 0x336   :  { %487 = vst [vmem:[#allocation8 + $0x8] sm:$0xff] %v324_v36  ;;  %489 = vst [vmem:[#allocation8 + $0x18] sm:$0xff] %v401_v37  ;;  %v327_v39 = vpop.f32.mrb[2].mxu1  ;;  %v404_v40 = vpop.f32.mrb[4].mxu0 }
 0x337   :  { %v328_v41 = vadd.f32 %v327_v39, %v222_v25  ;;  %v405_v42 = vadd.f32 %v404_v40, %v230_v26  ;;  %v329_v43 = vpop.f32.mrb[3].mxu1  ;;  %v406_v44 = vpop.f32.mrb[5].mxu0 }
 0x338   :  { %v330_v46 = vadd.f32 %v329_v43, %v226_v27  ;;  %v407_v47 = vadd.f32 %v406_v44, %v234_v28 }
 0x339   :  { %492 = vst [vmem:[#allocation8 + $0x30] sm:$0xff] %v328_v41  ;;  %494 = vst [vmem:[#allocation8 + $0x40] sm:$0xff] %v405_v42 }
 0x33a   :  { %493 = vst [vmem:[#allocation8 + $0x38] sm:$0xff] %v330_v46  ;;  %495 = vst [vmem:[#allocation8 + $0x48] sm:$0xff] %v407_v47  ;;  %v475_v49 = vpop.f32.mrb[4].mxu1 }
 0x33b   :  { %v476_v50 = vadd.f32 %v475_v49, %v238_v45  ;;  %v477_v51 = vpop.f32.mrb[5].mxu1 }
 0x33c   :  { %v478_v52 = vadd.f32 %v477_v51, %v242_v48 }
 0x33d   :  { %490 = vst [vmem:[#allocation8 + $0x20] sm:$0xff] %v476_v50 }
 0x33e   :  { %491 = vst [vmem:[#allocation8 + $0x28] sm:$0xff] %v478_v52  ;;  %v481_v53 = vpop.f32.mrb[6].mxu1 }
 0x33f   :  { %v482_v54 = vadd.f32 %v481_v53, %v238_v45  ;;  %v483_v55 = vpop.f32.mrb[7].mxu1 }
 0x340   :  { %v484_v56 = vadd.f32 %v483_v55, %v242_v48 }
 0x341   :  { %496 = vst [vmem:[#allocation8 + $0x50] sm:$0xff] %v482_v54 }
 0x342   :  { %497 = vst [vmem:[#allocation8 + $0x58] sm:$0xff] %v484_v56 }
 0x343   :  { %668 = shalt.err (!%p665_p0)
}
 0x344   :  { %s669_s12 = scalar_lea.hbm %s818_s5, 1536 }
 0x345   :  { %p670_p1 = scmp.ne.s32.totalorder %s818_s5, %s669_s12  ;;  %p673_p2 = scmp.lt.u32.totalorder %s669_s12, %s818_s5 }
 0x347   :  { %p675_p3 = pnand %p673_p2, %p670_p1 }
 0x349   :  { %678 = shalt.err (!%p675_p3)
}
 0x34a   :  { %509 = dma.vmem_to_hbm [thread:$0]  %s504_s8, 1536, %s818_s5, [#allocation4], %s690_s0, %s690_s0, %s691_s21  }
 0x34b   :  { %683 = dma.done.wait [#allocation4], 1536  }
 0x34c   :  { %684 = vsyncadd [#allocation4], 4294965760 }
 0x34d   :  { %513 = vsyncpa [#allocation3], 1 }
 0x34e   :  { %514 = vsyncpa [#allocation6], 1 }
 0x34f   :  { %515 = vsyncpa [#allocation4], 1 }

</bundles_post_ra>
